<compile_context>
chip_gen: v7x
topology: tpu7x:2x2x1
jax: 0.10.0
libtpu: 0.0.40
codegen_flags: <defaults>
</compile_context>

<pallas_src>
import functools

import jax
import jax.numpy as jnp
from jax.experimental import pallas as pl
from jax.experimental.pallas import tpu as pltpu

_MIB = 1024 * 1024


def _round_up(v, m):
    return ((v + m - 1) // m) * m


def _vmem_limit(needed_bytes):
    """Per-generation VMEM budget: ~1.5x need, capped with physical headroom."""
    try:
        phys = int(getattr(pltpu.get_tpu_info(), "vmem_capacity_bytes",
                           128 * _MIB))
    except Exception:
        phys = 128 * _MIB
    cap = (3 * phys) // 4            # ~48 MiB on v7x (64), ~96 MiB on v5e/v6e
    want = int(1.5 * needed_bytes)
    return int(max(16 * _MIB, min(cap, want)))


# ---------------------------------------------------------------------------
# Kernel A: hop stack   hop[layers] = x,   hop[t] = A @ hop[t+1]
# ---------------------------------------------------------------------------
def _hop_kernel(x_ref, a_ref, hop_ref, *, layers):
    l = pl.program_id(0)

    @pl.when(l == 0)
    def _():
        hop_ref[layers] = x_ref[...]          # seed the last timestep with x

    t = layers - 1 - l                        # timestep computed this step
    prev = hop_ref[t + 1]                     # (n_pad, f_pad) bf16
    nxt = jnp.dot(a_ref[...], prev, preferred_element_type=jnp.float32)
    hop_ref[t] = nxt.astype(hop_ref.dtype)


# ---------------------------------------------------------------------------
# Kernel B: fused input projection + GRU recurrence for one node-row block
# ---------------------------------------------------------------------------
def _gru_kernel(hop_ref, w_i_ref, w_h_ref, b_i_ref, b_hn_ref, h_out_ref,
                gi_ref, *, n_steps, h_pad):
    tm = hop_ref.shape[1]
    f_pad = hop_ref.shape[2]

    # Stage 2: all input-gate pre-activations of this row block in ONE matmul
    # (biases b_i{r,z,n} (+ b_h{r,z}) pre-folded), stored as a bf16 scratch.
    hops = hop_ref[...].reshape(n_steps * tm, f_pad)          # tile-aligned view
    gi = (jnp.dot(hops, w_i_ref[...], preferred_element_type=jnp.float32)
          + b_i_ref[...])
    gi_ref[...] = gi.reshape(n_steps, tm, 3 * h_pad).astype(gi_ref.dtype)

    # Stage 3: serial GRU recurrence; only the h-dependent matmul per step.
    w_h = w_h_ref[...]                                        # bf16
    b_hn = pl.broadcast_to(b_hn_ref[...], (tm, h_pad))        # hoisted

    def step(t, h):
        gh = jnp.dot(h.astype(w_h.dtype), w_h,
                     preferred_element_type=jnp.float32)      # (TM, 3H)
        git = gi_ref[t].astype(jnp.float32)
        r = jax.nn.sigmoid(git[:, :h_pad] + gh[:, :h_pad])
        z = jax.nn.sigmoid(git[:, h_pad:2 * h_pad] + gh[:, h_pad:2 * h_pad])
        n = jnp.tanh(git[:, 2 * h_pad:] + r * (gh[:, 2 * h_pad:] + b_hn))
        return n + z * (h - n)                                # == (1-z)n + z h

    h0 = jnp.zeros((tm, h_pad), jnp.float32)
    h = jax.lax.fori_loop(0, n_steps, step, h0, unroll=bool(n_steps <= 8))
    h_out_ref[...] = h.astype(h_out_ref.dtype)


def tree_gru_conv(x, ei, w_ih, w_hh, b_ih, b_hh, *, layers):
    """Pallas implementation of TreeGRUConv.forward (gru_layers == 1).

    x     : (N, F) float32 node features
    ei    : (2, E) int32 edge index (row0=src, row1=dst)
    w_ih  : (3H, F), w_hh : (3H, H), b_ih/b_hh : (3H,)  -- PyTorch GRU params
    returns (N, H) final hidden state.
    """
    n_nodes, in_feats = x.shape
    hidden = w_ih.shape[0] // 3
    n_steps = layers + 1

    f_pad = _round_up(max(in_feats, 128), 128)     # lane-dense hop stack
    h_pad = _round_up(max(hidden, 128), 128)       # lane-dense gates / output
    if n_nodes <= 128:
        n_pad = _round_up(max(n_nodes, 16), 16)    # bf16 sublane tile
        tm = n_pad
    else:
        n_pad = _round_up(n_nodes, 128)
        tm = 128                                   # parallel node-row blocks

    # --- Glue: dense aggregation matrix A[dst, src] = #edges src -> dst,
    #     built directly in the MXU dtype (small integer counts are exact). ---
    src, dst = ei[0], ei[1]
    adj = jnp.zeros((n_pad, n_pad), jnp.bfloat16).at[dst, src].add(1.0)

    x_p = (jnp.zeros((n_pad, f_pad), jnp.float32)
           .at[:n_nodes, :in_feats].set(x)
           .astype(jnp.bfloat16))

    # --- Glue: fused, padded, right-multiply GRU params (gate order r,z,n) ---
    def gate(w, g):                               # (3H, K) -> (K, H) of gate g
        return w[g * hidden:(g + 1) * hidden, :].T

    w_i = jnp.zeros((f_pad, 3 * h_pad), jnp.float32)
    w_h = jnp.zeros((h_pad, 3 * h_pad), jnp.float32)
    for g in range(3):
        w_i = w_i.at[:in_feats, g * h_pad:g * h_pad + hidden].set(gate(w_ih, g))
        w_h = w_h.at[:hidden, g * h_pad:g * h_pad + hidden].set(gate(w_hh, g))
    w_i = w_i.astype(jnp.bfloat16)
    w_h = w_h.astype(jnp.bfloat16)

    b_ir, b_iz, b_in = b_ih[:hidden], b_ih[hidden:2 * hidden], b_ih[2 * hidden:]
    b_hr, b_hz, b_hn = b_hh[:hidden], b_hh[hidden:2 * hidden], b_hh[2 * hidden:]
    b_i = jnp.zeros((1, 3 * h_pad), jnp.float32)
    b_i = b_i.at[0, 0:hidden].set(b_ir + b_hr)                # folded
    b_i = b_i.at[0, h_pad:h_pad + hidden].set(b_iz + b_hz)    # folded
    b_i = b_i.at[0, 2 * h_pad:2 * h_pad + hidden].set(b_in)
    b_hn_p = jnp.zeros((1, h_pad), jnp.float32).at[0, :hidden].set(b_hn)

    # ---------------- Kernel A: hop stack ----------------
    if layers == 0:
        hop = x_p.reshape(1, n_pad, f_pad)
    else:
        vmem_a = (2 * n_pad * n_pad * 2                 # A (double-buffer bound)
                  + 2 * n_pad * f_pad * 2               # x
                  + 2 * n_steps * n_pad * f_pad * 2     # resident hop output
                  + 2 * n_pad * f_pad * 4)              # f32 matmul temporaries
        cost_a = pl.CostEstimate(
            flops=int(2 * layers * n_pad * n_pad * f_pad),
            transcendentals=0,
            bytes_accessed=int(n_pad * n_pad * 2 + n_pad * f_pad * 2
                               + n_steps * n_pad * f_pad * 2))
        hop = pl.pallas_call(
            functools.partial(_hop_kernel, layers=layers),
            grid=(layers,),
            in_specs=[pl.BlockSpec((n_pad, f_pad), lambda l: (0, 0)),
                      pl.BlockSpec((n_pad, n_pad), lambda l: (0, 0))],
            out_specs=pl.BlockSpec((n_steps, n_pad, f_pad),
                                   lambda l: (0, 0, 0)),
            out_shape=jax.ShapeDtypeStruct((n_steps, n_pad, f_pad),
                                           jnp.bfloat16),
            compiler_params=pltpu.CompilerParams(
                dimension_semantics=("arbitrary",),
                vmem_limit_bytes=_vmem_limit(vmem_a)),
            cost_estimate=cost_a,
        )(x_p, adj)

    # ---------------- Kernel B: gate projection + GRU ----------------
    n_blocks = n_pad // tm
    vmem_b = (2 * n_steps * tm * f_pad * 2              # hop row block
              + 2 * (f_pad + h_pad) * 3 * h_pad * 2     # weights
              + n_steps * tm * 3 * h_pad * 2            # bf16 gi scratch
              + n_steps * tm * 3 * h_pad * 4            # f32 gi before cast
              + 10 * tm * h_pad * 4                     # per-step temporaries
              + 2 * tm * h_pad * 4)                     # output
    cost_b = pl.CostEstimate(
        flops=int(2 * n_steps * n_pad * f_pad * 3 * h_pad
                  + 2 * n_steps * n_pad * h_pad * 3 * h_pad),
        transcendentals=int(3 * n_steps * n_pad * h_pad),
        bytes_accessed=int(n_steps * n_pad * f_pad * 2
                           + (f_pad + h_pad) * 3 * h_pad * 2
                           + 4 * (3 * h_pad + h_pad)
                           + n_pad * h_pad * 4))

    out = pl.pallas_call(
        functools.partial(_gru_kernel, n_steps=n_steps, h_pad=h_pad),
        grid=(n_blocks,),
        in_specs=[pl.BlockSpec((n_steps, tm, f_pad), lambda i: (0, i, 0)),
                  pl.BlockSpec((f_pad, 3 * h_pad), lambda i: (0, 0)),
                  pl.BlockSpec((h_pad, 3 * h_pad), lambda i: (0, 0)),
                  pl.BlockSpec((1, 3 * h_pad), lambda i: (0, 0)),
                  pl.BlockSpec((1, h_pad), lambda i: (0, 0))],
        out_specs=pl.BlockSpec((tm, h_pad), lambda i: (i, 0)),
        out_shape=jax.ShapeDtypeStruct((n_pad, h_pad), jnp.float32),
        scratch_shapes=[pltpu.VMEM((n_steps, tm, 3 * h_pad), jnp.bfloat16)],
        compiler_params=pltpu.CompilerParams(
            dimension_semantics=("parallel",),
            vmem_limit_bytes=_vmem_limit(vmem_b)),
        cost_estimate=cost_b,
    )(hop, w_i, w_h, b_i, b_hn_p)

    # NOTE: padded node rows carry nonzero (bias-driven) hidden state; they
    # are sliced away here and must never be reduced over before this slice.
    return out[:n_nodes, :hidden]


def _reference(x, ei, w_ih, w_hh, b_ih, b_hh, layers):
    """Pure-JAX f32 reference of TreeGRUConv.forward (gru_layers == 1)."""
    n = x.shape[0]
    hidden = w_ih.shape[0] // 3
    src, dst = ei[0], ei[1]
    adj = jnp.zeros((n, n), jnp.float32).at[dst, src].add(1.0)
    msgs = [x]
    for _ in range(layers):
        msgs.insert(0, adj @ msgs[0])
    w_ir, w_iz, w_in = w_ih[:hidden], w_ih[hidden:2*hidden], w_ih[2*hidden:]
    w_hr, w_hz, w_hn = w_hh[:hidden], w_hh[hidden:2*hidden], w_hh[2*hidden:]
    b_ir, b_iz, b_in = b_ih[:hidden], b_ih[hidden:2*hidden], b_ih[2*hidden:]
    b_hr, b_hz, b_hn = b_hh[:hidden], b_hh[hidden:2*hidden], b_hh[2*hidden:]
    h = jnp.zeros((n, hidden), jnp.float32)
    for xt in msgs:
        r = jax.nn.sigmoid(xt @ w_ir.T + b_ir + h @ w_hr.T + b_hr)
        z = jax.nn.sigmoid(xt @ w_iz.T + b_iz + h @ w_hz.T + b_hz)
        nn_ = jnp.tanh(xt @ w_in.T + b_in + r * (h @ w_hn.T + b_hn))
        h = (1.0 - z) * nn_ + z * h
    return h


if __name__ == "__main__":
    N, F, H, LAYERS = 16, 8, 32, 3

    key = jax.random.PRNGKey(0)
    kx, k1, k2, k3, k4 = jax.random.split(key, 5)

    x = jax.random.normal(kx, (N, F), jnp.float32)

    # Deterministic binary tree: edge parent -> child for nodes 1..N-1.
    child = jnp.arange(1, N, dtype=jnp.int32)
    parent = (child - 1) // 2
    ei = jnp.stack([parent, child])            # (2, E): row0=src, row1=dst

    # PyTorch nn.GRU init: uniform(-1/sqrt(hidden), 1/sqrt(hidden)).
    bound = 1.0 / (float(H) ** 0.5)
    w_ih = jax.random.uniform(k1, (3 * H, F), jnp.float32, -bound, bound)
    w_hh = jax.random.uniform(k2, (3 * H, H), jnp.float32, -bound, bound)
    b_ih = jax.random.uniform(k3, (3 * H,), jnp.float32, -bound, bound)
    b_hh = jax.random.uniform(k4, (3 * H,), jnp.float32, -bound, bound)

    out = tree_gru_conv(x, ei, w_ih, w_hh, b_ih, b_hh, layers=LAYERS)
    jax.block_until_ready(out)

    assert out.shape == (N, H) and out.dtype == jnp.float32
    assert bool(jnp.all(jnp.isfinite(out)))

    ref = _reference(x, ei, w_ih, w_hh, b_ih, b_hh, LAYERS)
    max_err = float(jnp.max(jnp.abs(out - ref)))
    # bf16 MXU inputs / bf16 hop+gi storage with f32 accumulation -> loose tol.
    assert max_err < 0.2, f"max abs err {max_err}"

    print("KERNEL_OK")
</pallas_src>

<mosaic_0001>
module attributes {stable_mosaic.version = 11 : i64} {
  func.func @_hop_kernel(%arg0: i32, %arg1: memref<16x128xbf16, #tpu.memory_space<vmem>>, %arg2: memref<16x16xbf16, #tpu.memory_space<vmem>>, %arg3: memref<4x16x128xbf16, #tpu.memory_space<vmem>>) attributes {dimension_semantics = [#tpu.dimension_semantics<arbitrary>], iteration_bounds = array<i64: 3>, scalar_prefetch = 0 : i64, scratch_operands = 0 : i64, tpu.core_type = #tpu.core_type<tc>, window_params = [{pipeline_mode = #tpu.pipeline_mode<synchronous>, transform_indices = @transform_0, window_bounds = array<i64: 16, 128>}, {pipeline_mode = #tpu.pipeline_mode<synchronous>, transform_indices = @transform_1, window_bounds = array<i64: 16, 16>}, {pipeline_mode = #tpu.pipeline_mode<synchronous>, transform_indices = @transform_2, window_bounds = array<i64: 4, 16, 128>}]} {
    %c0_i32 = arith.constant 0 : i32
    %0 = arith.cmpi eq, %arg0, %c0_i32 : i32
    %1 = arith.extui %0 : i1 to i32
    %c0_i32_0 = arith.constant 0 : i32
    %2 = arith.cmpi ne, %1, %c0_i32_0 : i32
    scf.if %2 {
      %c0_6 = arith.constant 0 : index
      %c0_7 = arith.constant 0 : index
      %15 = vector.load %arg1[%c0_6, %c0_7] : memref<16x128xbf16, #tpu.memory_space<vmem>>, vector<16x128xbf16>
      %c3 = arith.constant 3 : index
      %c0_8 = arith.constant 0 : index
      %c0_9 = arith.constant 0 : index
      %16 = vector.load %arg3[%c3, %c0_8, %c0_9] : memref<4x16x128xbf16, #tpu.memory_space<vmem>>, vector<1x16x128xbf16>
      %17 = vector.shape_cast %16 : vector<1x16x128xbf16> to vector<16x128xbf16>
      %18 = vector.shape_cast %15 : vector<16x128xbf16> to vector<1x16x128xbf16>
      tpu.vector_store %arg3[%c3, %c0_8, %c0_9], %18 {strides = array<i32>} : memref<4x16x128xbf16, #tpu.memory_space<vmem>>, vector<1x16x128xbf16>,
    } else {
    }
    %c2_i32 = arith.constant 2 : i32
    %3 = arith.subi %c2_i32, %arg0 : i32
    %c1_i32 = arith.constant 1 : i32
    %4 = arith.addi %3, %c1_i32 : i32
    %5 = arith.index_cast %4 : i32 to index
    %c0 = arith.constant 0 : index
    %c0_1 = arith.constant 0 : index
    %6 = vector.load %arg3[%5, %c0, %c0_1] : memref<4x16x128xbf16, #tpu.memory_space<vmem>>, vector<1x16x128xbf16>
    %7 = vector.shape_cast %6 : vector<1x16x128xbf16> to vector<16x128xbf16>
    %c0_2 = arith.constant 0 : index
    %c0_3 = arith.constant 0 : index
    %8 = vector.load %arg2[%c0_2, %c0_3] : memref<16x16xbf16, #tpu.memory_space<vmem>>, vector<16x16xbf16>
    %cst = arith.constant dense<0.000000e+00> : vector<16x128xf32>
    %9 = tpu.matmul %8, %7, %cst {dimension_numbers = #tpu.dot_dimension_numbers<[1], [0], [0], [1], [0, 0, 1, 1], [], []>} : vector<16x16xbf16>, vector<16x128xbf16>, vector<16x128xf32> -> vector<16x128xf32>
    %10 = arith.truncf %9 : vector<16x128xf32> to vector<16x128xbf16>
    %11 = arith.index_cast %3 : i32 to index
    %c0_4 = arith.constant 0 : index
    %c0_5 = arith.constant 0 : index
    %12 = vector.load %arg3[%11, %c0_4, %c0_5] : memref<4x16x128xbf16, #tpu.memory_space<vmem>>, vector<1x16x128xbf16>
    %13 = vector.shape_cast %12 : vector<1x16x128xbf16> to vector<16x128xbf16>
    %14 = vector.shape_cast %10 : vector<16x128xbf16> to vector<1x16x128xbf16>
    tpu.vector_store %arg3[%11, %c0_4, %c0_5], %14 {strides = array<i32>} : memref<4x16x128xbf16, #tpu.memory_space<vmem>>, vector<1x16x128xbf16>,
    return
  }
  func.func @transform_0(%arg0: i32) -> (i32, i32) {
    %c0_i32 = arith.constant 0 : i32
    %c0_i32_0 = arith.constant 0 : i32
    %c0_i32_1 = arith.constant 0 : i32
    return %c0_i32, %c0_i32_0 : i32, i32
  }
  func.func @transform_1(%arg0: i32) -> (i32, i32) {
    %c0_i32 = arith.constant 0 : i32
    %c0_i32_0 = arith.constant 0 : i32
    %c0_i32_1 = arith.constant 0 : i32
    return %c0_i32, %c0_i32_0 : i32, i32
  }
  func.func @transform_2(%arg0: i32) -> (i32, i32, i32) {
    %c0_i32 = arith.constant 0 : i32
    %c0_i32_0 = arith.constant 0 : i32
    %c0_i32_1 = arith.constant 0 : i32
    %c0_i32_2 = arith.constant 0 : i32
    return %c0_i32, %c0_i32_0, %c0_i32_1 : i32, i32, i32
  }
}

</mosaic_0001>

<bundles_post_ra>
// kernel: tpu_custom_call.1
= control target key start
LH: loop header
LB: loop body
LE: loop exit
PB: predicated region body
PF: predicated region fallthrough
CT: control target
= control target key end

     0   :  { %7 = vsyncpa [#allocation3], 0  ;;  %s611_s0 = inlined_call_operand.hbm [shape: bf16[16,128], index: 0, kind: input, shape index: {}]   ;;  %s612_s1 = inlined_call_operand.hbm [shape: bf16[16,16], index: 1, kind: input, shape index: {}]   ;;  %s613_s2 = inlined_call_operand.hbm [shape: bf16[4,16,128], index: 2, kind: output, shape index: {}]  }
   0x1   :  { %8 = vsyncpa [#allocation6], 0 }
   0x2   :  { %9 = vsyncpa [#allocation4], 0  ;;  %s498_s9 = smov 0  }
   0x3 LB: > { %s504_s10 = sadd.s32 4294967295, %s472_s9   ;;  %p291_p0 = scmp.ge.s32.totalorder %s472_s9, 1  ;;  %s472_s9 = sphi %s498_s9, %s15_s9  }
   0x4   : > { %p83_p1 = scmp.lt.s32.totalorder %s472_s9, 4  ;;  %s474_s11 = smov [#allocation2]  }
   0x5   : > { %s95_s12 = sshll.u32 %s474_s11, 4  ;;  %p614_p4 = scmp.eq.s32.totalorder %s504_s10, 0  ;;  %s96_s12 = int_to_ptr.vmem [resolvable:$true] %s95_s12 }
   0x6   : > { %p509_p3 = pnand %p291_p0, %p83_p1  ;;  %s475_s14 = smov [#allocation5]  }
   0x7   : > { %s108_s15 = sshll.u32 %s475_s14, 4  ;;  %s372_s19 = scalar_lea.hbm %s611_s0, 128  ;;  %s522_s15 = int_to_ptr.vmem [resolvable:$true] %s108_s15 }
   0x8   : > { %s616_s13 = scalar_select %p509_p3, 1, 0 }
   0x9   : > { %p340_p5 = pneg %p509_p3  ;;  %p373_p7 = scmp.ne.s32.totalorder %s611_s0, %s372_s19 }
   0xa   : > { %p379_p11 = scmp.lt.u32.totalorder %s372_s19, %s611_s0 }
   0xb   : > { %p518_p6 = pnand %p614_p4, %p340_p5 }
   0xd   : > { %p374_p8 = pneg %p518_p6 }
   0xf   : > { %p375_p9 = pnand %p374_p8, %p373_p7 }
  0x11   : > { %p376_p10 = pneg %p375_p9 }
  0x13   : > { %p381_p12 = pnand %p379_p11, %p376_p10 }
  0x15   : > { %384 = shalt.err (!%p381_p12)
}
  0x16   : > { %s385_s24 = scalar_lea.vmem %s96_s12, 128  ;;  %p393_p5 = scmp.lt.s32.totalorder %s96_s12, %s96_s12 }
  0x17   : > { %p386_p13 = scmp.ne.s32.totalorder %s96_s12, %s385_s24  ;;  %p394_p2 = scmp.lt.s32.totalorder %s385_s24, %s385_s24 }
  0x19   : > { %p388_p0 = pnand %p386_p13, %p374_p8  ;;  %p395_p4 = por %p394_p2, %p393_p5 }
  0x1b   : > { %p389_p1 = pneg %p388_p0 }
  0x1d   : > { %p396_p3 = pnand %p395_p4, %p389_p1 }
  0x1f   : > { %399 = shalt.err (!%p396_p3)
}
  0x20   : > { %s476_s25 = smov 64   ;;  %s477_s26 = smov 4  }
  0x21   : > { %343 = dma.hbm_to_vmem [thread:$0]  (!%p518_p6), %s611_s0, 128, %s96_s12, [#allocation3], %s476_s25, %s476_s25, %s477_s26  }
  0x22   : > { %s400_s3 = scalar_lea.hbm %s612_s1, 128 }
  0x23   : > { %p401_p7 = scmp.ne.s32.totalorder %s612_s1, %s400_s3  ;;  %p407_p4 = scmp.lt.u32.totalorder %s400_s3, %s612_s1 }
  0x25   : > { %p403_p2 = pnand %p401_p7, %p374_p8 }
  0x27   : > { %p404_p3 = pneg %p403_p2 }
  0x29   : > { %p409_p9 = pnand %p407_p4, %p404_p3 }
  0x2b   : > { %412 = shalt.err (!%p409_p9)
}
  0x2c   : > { %s413_s8 = scalar_lea.vmem %s522_s15, 128  ;;  %p421_p13 = scmp.lt.s32.totalorder %s522_s15, %s522_s15 }
  0x2d   : > { %p414_p10 = scmp.ne.s32.totalorder %s522_s15, %s413_s8  ;;  %p422_p0 = scmp.lt.s32.totalorder %s413_s8, %s413_s8 }
  0x2f   : > { %p416_p11 = pnand %p414_p10, %p374_p8  ;;  %p423_p1 = por %p422_p0, %p421_p13 }
  0x31   : > { %p417_p12 = pneg %p416_p11 }
  0x33   : > { %p424_p5 = pnand %p423_p1, %p417_p12 }
  0x35   : > { %427 = shalt.err (!%p424_p5)
}
  0x36   : > { %346 = dma.hbm_to_vmem [thread:$0]  (!%p518_p6), %s612_s1, 128, %s522_s15, [#allocation6], %s476_s25, %s476_s25, %s477_s26  }
  0x37   : > { %p618_p7 = scmp.ne.s32.totalorder %s616_s13, 0 }
  0x38   : > { %p619_p2 = scmp.eq.s32.totalorder (!%p618_p7), %s504_s10, 0 }
  0x39   : > { %124 = sbr.rel (%p618_p7) target bundleno = 316 (0x13c), region = 28 }
  0x40   : > { %459 = dma.done.wait (%p619_p2), [#allocation3], 128   ;;  %p620_p8 = pmov %p619_p2 }
  0x41   : > { %p621_p3 = pmov %p619_p2 }
  0x42   : > { %461 = vsyncadd (%p620_p8), [#allocation3], 4294967168 }
  0x43   : > { %463 = dma.done.wait (%p621_p3), [#allocation6], 128   ;;  %p622_p4 = pmov %p619_p2 }
  0x44   : > { %p623_p9 = scmp.ne.s32.totalorder %s504_s10, 0 }
  0x45   : > { %465 = vsyncadd (%p622_p4), [#allocation6], 4294967168  ;;  %v145_v0 = vld [vmem:[#allocation2] sm:$0xff] (!%p623_p9)  }
  0x46   : > { %144 = sbr.rel (%p623_p9) target bundleno = 77 (0x4d), region = 40  ;;  %148 = vst [vmem:[#allocation7 + $0x18] sm:$0xff] (!%p623_p9), %v145_v0  }
  0x4d PF: > { %s151_s13 = ssub.s32 3, %s504_s10  ;;  %v478_v1 = vmov 0.0   ;;  %vm479_vm0 = vmmov 0   ;;  %v371_v3 = vld [vmem:[#allocation5] sm:$0xff]   ;;  %vm170_vm1 = vcmask 130048   ;;  %s150_s16 = ssub.s32 2, %s504_s10 }
  0x4e   : > { %322 = vmatprep.subr.bf16.mxu0 %v478_v1  ;;  %s311_s14 = sshll.u32 %s151_s13, 3  ;;  %324 = vmatprep.mubr.msk.bf16.mxu0 %vm479_vm0, %v478_v1  ;;  %s314_s17 = sshll.u32 %s150_s16, 3 }
  0x4f   : > { %s154_s15 = scalar_lea.vmem [#allocation7], %s311_s14  ;;  %s480_s18 = smov [#allocation7]  }
  0x50   : > { %v370_v2 = vld [vmem:[%s154_s15] sm:$0xff]   ;;  %s234_s19 = sshll.u32 %s480_s18, 4  ;;  %p351_p6 = scmp.eq.s32.totalorder %s504_s10, 2  ;;  %s235_s19 = int_to_ptr.vmem [resolvable:$true] %s234_s19 }
  0x51   : > { %323 = vmatpush3.bf16.msra.mxu0 %v370_v2  ;;  %s225_s20 = scalar_lea.vmem [#allocation7], %s314_s17  ;;  %s428_s21 = scalar_lea.vmem %s235_s19, 512 }
  0x52   : > { %p429_p10 = scmp.ne.s32.totalorder %s235_s19, %s428_s21  ;;  %p435_p13 = scmp.lt.s32.totalorder %s235_s19, %s235_s19 }
  0x53   : > { %p436_p0 = scmp.lt.s32.totalorder %s428_s21, %s428_s21 }
  0x54   : > { %325 = vmatmul.mubr.msk.bf16.vlgmr.msra.gmra.mrb[0].mxu0 %vm170_vm1, %v371_v3  ;;  %p430_p11 = pnand %p429_p10, %p351_p6 }
  0x55   : > { %p437_p1 = por %p436_p0, %p435_p13 }
  0x56   : > { %p431_p12 = pneg %p430_p11 }
  0x58   : > { %p438_p5 = pnand %p437_p1, %p431_p12 }
 0x127   : > { %v208_v4 = vpop.f32.mrb[0].mxu0 }
 0x128   : > { %v326_v5 = vpop.f32.mrb[1].mxu0 }
 0x129   : > { %v211_v6 = vpop.f32.mrb[2].mxu0 }
 0x12a   : > { %v318_v7 = vpack.c.bf16 %v211_v6, %v208_v4  ;;  %v327_v8 = vpop.f32.mrb[3].mxu0 }
 0x12c   : > { %319 = vst [vmem:[%s225_s20] sm:$0xff] %v318_v7  }
 0x12d   : > { %441 = shalt.err (!%p438_p5)
}
 0x12e   : > { %s442_s24 = scalar_lea.hbm %s613_s2, 512 }
 0x12f   : > { %p443_p7 = scmp.ne.s32.totalorder %s613_s2, %s442_s24  ;;  %p448_p3 = scmp.lt.u32.totalorder %s442_s24, %s613_s2 }
 0x131   : > { %p444_p2 = pnand %p443_p7, %p351_p6 }
 0x133   : > { %p445_p8 = pneg %p444_p2 }
 0x135   : > { %p450_p4 = pnand %p448_p3, %p445_p8 }
 0x137   : > { %453 = shalt.err (!%p450_p4)
}
 0x138   : > { %s481_s29 = smov 64   ;;  %s482_s30 = smov 4  }
 0x139   : > { %337 = dma.vmem_to_hbm [thread:$0]  (%p351_p6), %s235_s19, 512, %s613_s2, [#allocation4], %s481_s29, %s481_s29, %s482_s30  }
 0x13a   : > { %467 = dma.done.wait (%p351_p6), [#allocation4], 512  }
 0x13b   : > { %469 = vsyncadd (%p351_p6), [#allocation4], 4294966784 }
 0x13c PF: > { %s15_s9 = sadd.s32 1, %s472_s9  }
 0x13d   : > { %p12_p9 = scmp.ge.s32.totalorder %s15_s9, 5  }
 0x13f   :  { %14 = sbr.rel (!%p12_p9) target bundleno = 3 (0x3), region = 68 }
 0x146   :  { %250 = vsyncpa [#allocation3], 1 }
 0x147   :  { %252 = vsyncpa [#allocation3 + $0x1], 1 }
 0x148   :  { %253 = vsyncpa [#allocation6], 1 }
 0x149   :  { %254 = vsyncpa [#allocation4], 1 }
 0x14a   :  { %256 = vsyncpa [#allocation4 + $0x1], 1 }

</bundles_post_ra>
